<compile_context>
chip_gen: v5e
topology: v5e:2x2
jax: 0.10.0
libtpu: 0.0.40
codegen_flags: <defaults>
</compile_context>

<pallas_src>
import functools

import numpy as np
import jax
import jax.numpy as jnp
from jax import lax
from jax.experimental import pallas as pl
from jax.experimental.pallas import tpu as pltpu


def _round_up(x, m):
    return (x + m - 1) // m * m


def _roi_align_kernel(batch_idx_ref, boxes_ref, feat_ref, out_ref,
                      wy_ref, wx_ref, w2_ref, *, pooled, height, width, scale):
    """One (ROI, channel-tile) grid step.

    boxes_ref : SMEM (4, K)   rows [x1, y1, x2, y2], K columns
    feat_ref  : VMEM (1, H*W, TC)  lane-dense image slab for this ROI's batch
    out_ref   : VMEM (1, P*P, TC)
    wy_ref    : VMEM (P, H*W) f32 scratch (row = ph, accumulated y weights)
    wx_ref    : VMEM (P, H*W) f32 scratch (row = pw, accumulated x weights)
    w2_ref    : VMEM (P*P, H*W) f32 scratch (combined bilinear weights)
    """
    del batch_idx_ref                      # consumed by the feature index_map
    k = pl.program_id(0)
    hw = height * width

    # Grid-invariant index rows: flat pixel s -> (h, w).  Tiny after the
    # separable rewrite (one (1, H*W) iota + divide/trunc), so it stays inline.
    s_f = lax.broadcasted_iota(jnp.int32, (1, hw), 1).astype(jnp.float32)
    h_row = (s_f / float(width)).astype(jnp.int32).astype(jnp.float32)
    w_row = s_f - h_row * float(width)
    # Pooled-bin index down the sublanes.
    p_col = lax.broadcasted_iota(jnp.int32, (pooled, 1), 0).astype(jnp.float32)

    x1 = boxes_ref[0, k]
    y1 = boxes_ref[1, k]
    x2 = boxes_ref[2, k]
    y2 = boxes_ref[3, k]

    def axis_weights(acc_ref, c0, c1, size, idx_row):
        # All per-ROI quantities are rank-0 scalars derived from SMEM reads.
        start = c0 * scale
        roi = jnp.maximum(c1 * scale - start, 1.0)       # aligned=False clamp
        bin_sz = roi * (1.0 / pooled)
        bin_t = bin_sz.astype(jnp.int32)                 # trunc (bin_sz > 0)
        grid_n = bin_t + (bin_sz > bin_t.astype(jnp.float32)).astype(jnp.int32)
        grid_n = jnp.maximum(grid_n, 1)                  # ceil(bin_sz) >= 1
        inv_grid = 1.0 / grid_n.astype(jnp.float32)
        step = bin_sz * inv_grid
        base = start + p_col * bin_sz + 0.5 * step       # (P, 1)

        acc_ref[...] = jnp.zeros_like(acc_ref)

        # Dynamic trip count: exactly the samples this ROI needs (adaptive
        # sampling_ratio = -1). No max_grid truncation, no dead iterations.
        def sample(si, carry):
            coord = base + si * step                              # (P, 1)
            in_range = (coord >= -1.0) & (coord <= float(size))   # (P, 1)
            c = jnp.clip(coord, 0.0, float(size))
            low = jnp.minimum(c.astype(jnp.int32).astype(jnp.float32),
                              float(size - 1))
            high = jnp.minimum(low + 1.0, float(size - 1))
            frac = c - low
            wgt = (jnp.where(idx_row == low, 1.0 - frac, 0.0) +
                   jnp.where(idx_row == high, frac, 0.0))         # (P, H*W)
            acc_ref[...] += jnp.where(in_range, wgt, 0.0)
            return carry

        lax.fori_loop(0, grid_n, sample, 0)
        return inv_grid

    inv_gy = axis_weights(wy_ref, y1, y2, height, h_row)   # rows indexed by ph
    inv_gx = axis_weights(wx_ref, x1, x2, width, w_row)    # rows indexed by pw

    # W2[ph*P + pw, s] = wy[ph, s] * wx[pw, s] / (grid_h * grid_w).
    # P sublane-broadcast row-block stores: no reshape / relayout / rank-3 dot.
    wx_n = wx_ref[...] * (inv_gy * inv_gx)                  # (P, H*W)
    for ph in range(pooled):
        w2_ref[pl.ds(ph * pooled, pooled), :] = wy_ref[pl.ds(ph, 1), :] * wx_n

    # One lane-dense MXU matmul per (ROI, channel tile); features keep their
    # native dtype (bf16 halves DMA bytes, full-rate MXU), f32 accumulation.
    feat = feat_ref[0]                                      # (H*W, TC)
    out = jnp.dot(w2_ref[...].astype(feat.dtype), feat,
                  preferred_element_type=jnp.float32)
    out_ref[0] = out.astype(out_ref.dtype)


def roi_align_tpu(features, boxes, output_size, spatial_scale=1.0,
                  channel_tile=512):
    """features: (N, C, H, W); boxes: (K, 5) [batch, x1, y1, x2, y2] (image coords)."""
    N, C, H, W = features.shape
    K = boxes.shape[0]
    P = int(output_size)
    HW = H * W
    assert HW < (1 << 24), "flat-pixel index decomposition needs H*W < 2^24"

    # Lane-dense feature layout: NCHW -> NHWC -> (N, H*W, C); keep native dtype.
    feat_flat = jnp.transpose(features, (0, 2, 3, 1)).reshape(N, HW, C)

    # Clip batch indices (an OOB index would otherwise DMA a garbage block).
    batch_idx = jnp.clip(boxes[:, 0].astype(jnp.int32), 0, N - 1)

    # Sort ROIs by batch index so consecutive grid steps keep the same feature
    # block (Pallas skips the image DMA when the block index is unchanged).
    order = jnp.argsort(batch_idx)
    inv_order = jnp.argsort(order)
    batch_sorted = jnp.take(batch_idx, order)
    boxes_sorted_t = jnp.take(boxes[:, 1:5].astype(jnp.float32), order, axis=0).T  # (4, K)

    # Channel tiling bounds feature VMEM independently of C (needed on v7x).
    tc = C if C <= channel_tile else channel_tile
    n_ct = (C + tc - 1) // tc

    kernel = functools.partial(_roi_align_kernel, pooled=P, height=H, width=W,
                               scale=float(spatial_scale))

    grid_spec = pltpu.PrefetchScalarGridSpec(
        num_scalar_prefetch=1,
        grid=(K, n_ct),
        in_specs=[
            # box coords in SMEM, K-last to avoid (K, 4) SMEM padding blow-up
            pl.BlockSpec(memory_space=pltpu.MemorySpace.SMEM),
            # (1, H*W, TC) slab of the sorted ROI's image, selected by batch idx
            pl.BlockSpec((1, HW, tc), lambda k, ct, bidx: (bidx[k], 0, ct)),
        ],
        out_specs=pl.BlockSpec((1, P * P, tc), lambda k, ct, bidx: (k, 0, ct)),
        scratch_shapes=[
            pltpu.VMEM((P, HW), jnp.float32),        # wy  (per-axis weights)
            pltpu.VMEM((P, HW), jnp.float32),        # wx
            pltpu.VMEM((P * P, HW), jnp.float32),    # combined weights
        ],
    )

    # VMEM budget: double-buffered feature/output blocks + weight scratch,
    # capped at ~80% of this chip's physical VMEM (v5e/v6e 128 MiB, v7x 64 MiB).
    esize = jnp.dtype(features.dtype).itemsize
    feat_block = _round_up(HW, 8) * _round_up(tc, 128) * esize
    out_block = _round_up(P * P, 8) * _round_up(tc, 128) * esize
    w_scratch = (2 * _round_up(P, 8) + _round_up(P * P, 8)) * _round_up(HW, 128) * 4
    needed = 2 * feat_block + 2 * out_block + w_scratch + (4 << 20)
    try:
        phys = int(pltpu.get_tpu_info().vmem_capacity_bytes)
    except Exception:
        phys = 64 << 20                      # conservative (v7x) fallback
    cap = max(32 << 20, (phys * 4) // 5)
    vmem_limit = int(min(max(needed, 32 << 20), cap))

    # TODO(synk): batch ROIs sharing a batch index into one grid step (MoE-group
    # scalar-prefetch pattern) to fill the 128/256-row MXU, and switch to a
    # factored two-stage contraction for very large H*W maps to drop the
    # (P*P, H*W) weight scratch entirely.
    out = pl.pallas_call(
        kernel,
        out_shape=jax.ShapeDtypeStruct((K, P * P, C), features.dtype),
        grid_spec=grid_spec,
        compiler_params=pltpu.CompilerParams(
            dimension_semantics=("parallel", "arbitrary"),
            vmem_limit_bytes=vmem_limit,
        ),
    )(batch_sorted, boxes_sorted_t, feat_flat)

    # (K, P*P, C) -> (K, P, P, C) -> (K, C, P, P), then undo the batch sort.
    out = out.reshape(K, P, P, C).transpose(0, 3, 1, 2)
    return jnp.take(out, inv_order, axis=0)


class ROI_ALIGN:
    """JAX/Pallas equivalent of the PyTorch ROI_ALIGN module (no parameters)."""

    def __init__(self, kernel_size, scale=1.0):
        self.kernel = kernel_size
        self.scale = scale

    def __call__(self, features, boxes):
        return roi_align_tpu(features, boxes, self.kernel, self.scale)


# ---------------- pure-numpy reference (torchvision algorithm) ----------------
def _roi_align_ref(feat, boxes, pooled, scale):
    feat = np.asarray(feat, np.float64)
    boxes = np.asarray(boxes, np.float64)
    N, C, H, W = feat.shape
    K = boxes.shape[0]
    out = np.zeros((K, C, pooled, pooled), np.float64)

    def bilinear(fm, y, x):
        if y < -1.0 or y > H or x < -1.0 or x > W:
            return np.zeros(fm.shape[0])
        y = max(y, 0.0)
        x = max(x, 0.0)
        y_low = int(y)
        x_low = int(x)
        if y_low >= H - 1:
            y_low = y_high = H - 1
            y = float(y_low)
        else:
            y_high = y_low + 1
        if x_low >= W - 1:
            x_low = x_high = W - 1
            x = float(x_low)
        else:
            x_high = x_low + 1
        ly, lx = y - y_low, x - x_low
        hy, hx = 1.0 - ly, 1.0 - lx
        return (hy * hx * fm[:, y_low, x_low] + hy * lx * fm[:, y_low, x_high] +
                ly * hx * fm[:, y_high, x_low] + ly * lx * fm[:, y_high, x_high])

    for k in range(K):
        n = int(boxes[k, 0])
        x1, y1, x2, y2 = boxes[k, 1:] * scale
        roi_w = max(x2 - x1, 1.0)
        roi_h = max(y2 - y1, 1.0)
        bin_w = roi_w / pooled
        bin_h = roi_h / pooled
        gh = int(np.ceil(roi_h / pooled))
        gw = int(np.ceil(roi_w / pooled))
        for ph in range(pooled):
            for pw in range(pooled):
                acc = np.zeros(C)
                for iy in range(gh):
                    yy = y1 + ph * bin_h + (iy + 0.5) * bin_h / gh
                    for ix in range(gw):
                        xx = x1 + pw * bin_w + (ix + 0.5) * bin_w / gw
                        acc += bilinear(feat[n], yy, xx)
                out[k, :, ph, pw] = acc / (gh * gw)
    return out.astype(np.float32)


if __name__ == "__main__":
    key = jax.random.PRNGKey(0)
    N, C, H, W = 2, 4, 16, 16
    K, P = 6, 4
    scale = 0.5
    img_extent = float(H) / scale  # boxes live in image coords

    kf, kx, ky, kn = jax.random.split(key, 4)
    features = jax.random.normal(kf, (N, C, H, W), jnp.float32)
    xs = jax.random.uniform(kx, (K, 2), minval=0.0, maxval=img_extent - 1.0)
    ys = jax.random.uniform(ky, (K, 2), minval=0.0, maxval=img_extent - 1.0)
    x1, x2 = jnp.min(xs, axis=1), jnp.max(xs, axis=1)
    y1, y2 = jnp.min(ys, axis=1), jnp.max(ys, axis=1)
    bidx = jax.random.randint(kn, (K,), 0, N).astype(jnp.float32)
    boxes = jnp.stack([bidx, x1, y1, x2, y2], axis=1)  # (K, 5)

    module = ROI_ALIGN(kernel_size=P, scale=scale)
    out = module(features, boxes)
    out = jax.block_until_ready(out)

    ref = _roi_align_ref(features, boxes, P, scale)
    np.testing.assert_allclose(np.asarray(out), ref, rtol=1e-3, atol=1e-3)

    print("KERNEL_OK")
</pallas_src>

<mosaic_0001>
module attributes {stable_mosaic.version = 11 : i64} {
  func.func @_roi_align_kernel(%arg0: i32, %arg1: i32, %arg2: memref<6xi32, #tpu.memory_space<smem>>, %arg3: memref<4x6xf32, #tpu.memory_space<smem>>, %arg4: memref<1x256x4xf32, #tpu.memory_space<vmem>>, %arg5: memref<1x16x4xf32, #tpu.memory_space<vmem>>, %arg6: memref<4x256xf32, #tpu.memory_space<vmem>>, %arg7: memref<4x256xf32, #tpu.memory_space<vmem>>, %arg8: memref<16x256xf32, #tpu.memory_space<vmem>>) attributes {dimension_semantics = [#tpu.dimension_semantics<parallel>, #tpu.dimension_semantics<arbitrary>], iteration_bounds = array<i64: 6, 1>, scalar_prefetch = 1 : i64, scratch_operands = 3 : i64, tpu.core_type = #tpu.core_type<tc>, window_params = [{transform_indices = @transform_0, window_bounds = array<i64: 4, 6>}, {transform_indices = @transform_1, window_bounds = array<i64: 1, 256, 4>}, {transform_indices = @transform_2, window_bounds = array<i64: 1, 16, 4>}]} {
    %0 = tpu.iota {dimensions = array<i32: 1>} : vector<1x256xi32>
    %1 = arith.sitofp %0 : vector<1x256xi32> to vector<1x256xf32>
    %cst = arith.constant 1.600000e+01 : f32
    %2 = vector.broadcast %cst : f32 to vector<1x256xf32>
    %3 = arith.divf %1, %2 : vector<1x256xf32>
    %4 = arith.fptosi %3 : vector<1x256xf32> to vector<1x256xi32>
    %5 = arith.sitofp %4 : vector<1x256xi32> to vector<1x256xf32>
    %cst_0 = arith.constant 1.600000e+01 : f32
    %6 = vector.broadcast %cst_0 : f32 to vector<1x256xf32>
    %7 = arith.mulf %5, %6 : vector<1x256xf32>
    %8 = arith.subf %1, %7 : vector<1x256xf32>
    %9 = tpu.iota {dimensions = array<i32: 0>} : vector<4x1xi32>
    %10 = arith.sitofp %9 : vector<4x1xi32> to vector<4x1xf32>
    %c0 = arith.constant 0 : index
    %11 = arith.index_cast %arg0 : i32 to index
    %12 = memref.load %arg3[%c0, %11] : memref<4x6xf32, #tpu.memory_space<smem>>
    %c1 = arith.constant 1 : index
    %13 = arith.index_cast %arg0 : i32 to index
    %14 = memref.load %arg3[%c1, %13] : memref<4x6xf32, #tpu.memory_space<smem>>
    %c2 = arith.constant 2 : index
    %15 = arith.index_cast %arg0 : i32 to index
    %16 = memref.load %arg3[%c2, %15] : memref<4x6xf32, #tpu.memory_space<smem>>
    %c3 = arith.constant 3 : index
    %17 = arith.index_cast %arg0 : i32 to index
    %18 = memref.load %arg3[%c3, %17] : memref<4x6xf32, #tpu.memory_space<smem>>
    %cst_1 = arith.constant 5.000000e-01 : f32
    %19 = arith.mulf %14, %cst_1 : f32
    %cst_2 = arith.constant 5.000000e-01 : f32
    %20 = arith.mulf %18, %cst_2 : f32
    %21 = arith.subf %20, %19 : f32
    %cst_3 = arith.constant 1.000000e+00 : f32
    %22 = arith.maximumf %21, %cst_3 : f32
    %cst_4 = arith.constant 2.500000e-01 : f32
    %23 = arith.mulf %22, %cst_4 : f32
    %24 = arith.fptosi %23 : f32 to i32
    %25 = arith.sitofp %24 : i32 to f32
    %26 = arith.cmpf ogt, %23, %25 : f32
    %27 = arith.extui %26 : i1 to i32
    %28 = arith.addi %24, %27 : i32
    %c1_i32 = arith.constant 1 : i32
    %29 = arith.maxsi %28, %c1_i32 : i32
    %30 = arith.sitofp %29 : i32 to f32
    %cst_5 = arith.constant 1.000000e+00 : f32
    %31 = arith.divf %cst_5, %30 : f32
    %32 = arith.mulf %23, %31 : f32
    %33 = vector.broadcast %23 : f32 to vector<4x1xf32>
    %34 = arith.mulf %10, %33 : vector<4x1xf32>
    %35 = vector.broadcast %19 : f32 to vector<4x1xf32>
    %36 = arith.addf %35, %34 : vector<4x1xf32>
    %cst_6 = arith.constant 5.000000e-01 : f32
    %37 = arith.mulf %cst_6, %32 : f32
    %38 = vector.broadcast %37 : f32 to vector<4x1xf32>
    %39 = arith.addf %36, %38 : vector<4x1xf32>
    %cst_7 = arith.constant 0.000000e+00 : f32
    %40 = vector.broadcast %cst_7 : f32 to vector<4x256xf32>
    %c0_8 = arith.constant 0 : index
    %c0_9 = arith.constant 0 : index
    %41 = vector.load %arg6[%c0_8, %c0_9] : memref<4x256xf32, #tpu.memory_space<vmem>>, vector<4x256xf32>
    tpu.vector_store %arg6[%c0_8, %c0_9], %40 {strides = array<i32>} : memref<4x256xf32, #tpu.memory_space<vmem>>, vector<4x256xf32>,
    %c0_i32 = arith.constant 0 : i32
    %c0_i32_10 = arith.constant 0 : i32
    %42 = arith.subi %29, %c0_i32_10 : i32
    %43 = arith.addi %c0_i32_10, %42 : i32
    %c1_i32_11 = arith.constant 1 : i32
    scf.for %arg9 = %c0_i32_10 to %43 step %c1_i32_11  : i32 {
      %96 = arith.sitofp %arg9 : i32 to f32
      %97 = arith.mulf %96, %32 : f32
      %98 = vector.broadcast %97 : f32 to vector<4x1xf32>
      %99 = arith.addf %39, %98 : vector<4x1xf32>
      %cst_49 = arith.constant -1.000000e+00 : f32
      %100 = vector.broadcast %cst_49 : f32 to vector<4x1xf32>
      %101 = arith.cmpf oge, %99, %100 : vector<4x1xf32>
      %cst_50 = arith.constant 1.600000e+01 : f32
      %102 = vector.broadcast %cst_50 : f32 to vector<4x1xf32>
      %103 = arith.cmpf ole, %99, %102 : vector<4x1xf32>
      %104 = arith.andi %101, %103 : vector<4x1xi1>
      %cst_51 = arith.constant 0.000000e+00 : f32
      %cst_52 = arith.constant 1.600000e+01 : f32
      %105 = vector.broadcast %cst_51 : f32 to vector<4x1xf32>
      %106 = arith.maximumf %105, %99 : vector<4x1xf32>
      %107 = vector.broadcast %cst_52 : f32 to vector<4x1xf32>
      %108 = arith.minimumf %107, %106 : vector<4x1xf32>
      %109 = arith.fptosi %108 : vector<4x1xf32> to vector<4x1xi32>
      %110 = arith.sitofp %109 : vector<4x1xi32> to vector<4x1xf32>
      %cst_53 = arith.constant 1.500000e+01 : f32
      %111 = vector.broadcast %cst_53 : f32 to vector<4x1xf32>
      %112 = arith.minimumf %110, %111 : vector<4x1xf32>
      %cst_54 = arith.constant 1.000000e+00 : f32
      %113 = vector.broadcast %cst_54 : f32 to vector<4x1xf32>
      %114 = arith.addf %112, %113 : vector<4x1xf32>
      %cst_55 = arith.constant 1.500000e+01 : f32
      %115 = vector.broadcast %cst_55 : f32 to vector<4x1xf32>
      %116 = arith.minimumf %114, %115 : vector<4x1xf32>
      %117 = arith.subf %108, %112 : vector<4x1xf32>
      %118 = vector.broadcast %5 : vector<1x256xf32> to vector<4x256xf32>
      %119 = vector.broadcast %112 : vector<4x1xf32> to vector<4x256xf32>
      %120 = arith.cmpf oeq, %118, %119 : vector<4x256xf32>
      %cst_56 = arith.constant 1.000000e+00 : f32
      %121 = vector.broadcast %cst_56 : f32 to vector<4x1xf32>
      %122 = arith.subf %121, %117 : vector<4x1xf32>
      %cst_57 = arith.constant 0.000000e+00 : f32
      %123 = vector.shape_cast %122 : vector<4x1xf32> to vector<4x1xf32>
      %124 = vector.broadcast %123 : vector<4x1xf32> to vector<4x256xf32>
      %125 = vector.broadcast %cst_57 : f32 to vector<4x256xf32>
      %126 = arith.select %120, %124, %125 : vector<4x256xi1>, vector<4x256xf32>
      %127 = vector.broadcast %5 : vector<1x256xf32> to vector<4x256xf32>
      %128 = vector.broadcast %116 : vector<4x1xf32> to vector<4x256xf32>
      %129 = arith.cmpf oeq, %127, %128 : vector<4x256xf32>
      %cst_58 = arith.constant 0.000000e+00 : f32
      %130 = vector.shape_cast %117 : vector<4x1xf32> to vector<4x1xf32>
      %131 = vector.broadcast %130 : vector<4x1xf32> to vector<4x256xf32>
      %132 = vector.broadcast %cst_58 : f32 to vector<4x256xf32>
      %133 = arith.select %129, %131, %132 : vector<4x256xi1>, vector<4x256xf32>
      %134 = arith.addf %126, %133 : vector<4x256xf32>
      %c0_59 = arith.constant 0 : index
      %c0_60 = arith.constant 0 : index
      %135 = vector.load %arg6[%c0_59, %c0_60] : memref<4x256xf32, #tpu.memory_space<vmem>>, vector<4x256xf32>
      %cst_61 = arith.constant 0.000000e+00 : f32
      %136 = vector.shape_cast %104 : vector<4x1xi1> to vector<4x1xi1>
      %137 = vector.broadcast %136 : vector<4x1xi1> to vector<4x256xi1>
      %138 = vector.broadcast %cst_61 : f32 to vector<4x256xf32>
      %139 = arith.select %137, %134, %138 : vector<4x256xi1>, vector<4x256xf32>
      %140 = arith.addf %135, %139 : vector<4x256xf32>
      %c0_62 = arith.constant 0 : index
      %c0_63 = arith.constant 0 : index
      %141 = vector.load %arg6[%c0_62, %c0_63] : memref<4x256xf32, #tpu.memory_space<vmem>>, vector<4x256xf32>
      tpu.vector_store %arg6[%c0_62, %c0_63], %140 {strides = array<i32>} : memref<4x256xf32, #tpu.memory_space<vmem>>, vector<4x256xf32>,
    }
    %cst_12 = arith.constant 5.000000e-01 : f32
    %44 = arith.mulf %12, %cst_12 : f32
    %cst_13 = arith.constant 5.000000e-01 : f32
    %45 = arith.mulf %16, %cst_13 : f32
    %46 = arith.subf %45, %44 : f32
    %cst_14 = arith.constant 1.000000e+00 : f32
    %47 = arith.maximumf %46, %cst_14 : f32
    %cst_15 = arith.constant 2.500000e-01 : f32
    %48 = arith.mulf %47, %cst_15 : f32
    %49 = arith.fptosi %48 : f32 to i32
    %50 = arith.sitofp %49 : i32 to f32
    %51 = arith.cmpf ogt, %48, %50 : f32
    %52 = arith.extui %51 : i1 to i32
    %53 = arith.addi %49, %52 : i32
    %c1_i32_16 = arith.constant 1 : i32
    %54 = arith.maxsi %53, %c1_i32_16 : i32
    %55 = arith.sitofp %54 : i32 to f32
    %cst_17 = arith.constant 1.000000e+00 : f32
    %56 = arith.divf %cst_17, %55 : f32
    %57 = arith.mulf %48, %56 : f32
    %58 = vector.broadcast %48 : f32 to vector<4x1xf32>
    %59 = arith.mulf %10, %58 : vector<4x1xf32>
    %60 = vector.broadcast %44 : f32 to vector<4x1xf32>
    %61 = arith.addf %60, %59 : vector<4x1xf32>
    %cst_18 = arith.constant 5.000000e-01 : f32
    %62 = arith.mulf %cst_18, %57 : f32
    %63 = vector.broadcast %62 : f32 to vector<4x1xf32>
    %64 = arith.addf %61, %63 : vector<4x1xf32>
    %cst_19 = arith.constant 0.000000e+00 : f32
    %65 = vector.broadcast %cst_19 : f32 to vector<4x256xf32>
    %c0_20 = arith.constant 0 : index
    %c0_21 = arith.constant 0 : index
    %66 = vector.load %arg7[%c0_20, %c0_21] : memref<4x256xf32, #tpu.memory_space<vmem>>, vector<4x256xf32>
    tpu.vector_store %arg7[%c0_20, %c0_21], %65 {strides = array<i32>} : memref<4x256xf32, #tpu.memory_space<vmem>>, vector<4x256xf32>,
    %c0_i32_22 = arith.constant 0 : i32
    %c0_i32_23 = arith.constant 0 : i32
    %67 = arith.subi %54, %c0_i32_23 : i32
    %68 = arith.addi %c0_i32_23, %67 : i32
    %c1_i32_24 = arith.constant 1 : i32
    scf.for %arg9 = %c0_i32_23 to %68 step %c1_i32_24  : i32 {
      %96 = arith.sitofp %arg9 : i32 to f32
      %97 = arith.mulf %96, %57 : f32
      %98 = vector.broadcast %97 : f32 to vector<4x1xf32>
      %99 = arith.addf %64, %98 : vector<4x1xf32>
      %cst_49 = arith.constant -1.000000e+00 : f32
      %100 = vector.broadcast %cst_49 : f32 to vector<4x1xf32>
      %101 = arith.cmpf oge, %99, %100 : vector<4x1xf32>
      %cst_50 = arith.constant 1.600000e+01 : f32
      %102 = vector.broadcast %cst_50 : f32 to vector<4x1xf32>
      %103 = arith.cmpf ole, %99, %102 : vector<4x1xf32>
      %104 = arith.andi %101, %103 : vector<4x1xi1>
      %cst_51 = arith.constant 0.000000e+00 : f32
      %cst_52 = arith.constant 1.600000e+01 : f32
      %105 = vector.broadcast %cst_51 : f32 to vector<4x1xf32>
      %106 = arith.maximumf %105, %99 : vector<4x1xf32>
      %107 = vector.broadcast %cst_52 : f32 to vector<4x1xf32>
      %108 = arith.minimumf %107, %106 : vector<4x1xf32>
      %109 = arith.fptosi %108 : vector<4x1xf32> to vector<4x1xi32>
      %110 = arith.sitofp %109 : vector<4x1xi32> to vector<4x1xf32>
      %cst_53 = arith.constant 1.500000e+01 : f32
      %111 = vector.broadcast %cst_53 : f32 to vector<4x1xf32>
      %112 = arith.minimumf %110, %111 : vector<4x1xf32>
      %cst_54 = arith.constant 1.000000e+00 : f32
      %113 = vector.broadcast %cst_54 : f32 to vector<4x1xf32>
      %114 = arith.addf %112, %113 : vector<4x1xf32>
      %cst_55 = arith.constant 1.500000e+01 : f32
      %115 = vector.broadcast %cst_55 : f32 to vector<4x1xf32>
      %116 = arith.minimumf %114, %115 : vector<4x1xf32>
      %117 = arith.subf %108, %112 : vector<4x1xf32>
      %118 = vector.broadcast %8 : vector<1x256xf32> to vector<4x256xf32>
      %119 = vector.broadcast %112 : vector<4x1xf32> to vector<4x256xf32>
      %120 = arith.cmpf oeq, %118, %119 : vector<4x256xf32>
      %cst_56 = arith.constant 1.000000e+00 : f32
      %121 = vector.broadcast %cst_56 : f32 to vector<4x1xf32>
      %122 = arith.subf %121, %117 : vector<4x1xf32>
      %cst_57 = arith.constant 0.000000e+00 : f32
      %123 = vector.shape_cast %122 : vector<4x1xf32> to vector<4x1xf32>
      %124 = vector.broadcast %123 : vector<4x1xf32> to vector<4x256xf32>
      %125 = vector.broadcast %cst_57 : f32 to vector<4x256xf32>
      %126 = arith.select %120, %124, %125 : vector<4x256xi1>, vector<4x256xf32>
      %127 = vector.broadcast %8 : vector<1x256xf32> to vector<4x256xf32>
      %128 = vector.broadcast %116 : vector<4x1xf32> to vector<4x256xf32>
      %129 = arith.cmpf oeq, %127, %128 : vector<4x256xf32>
      %cst_58 = arith.constant 0.000000e+00 : f32
      %130 = vector.shape_cast %117 : vector<4x1xf32> to vector<4x1xf32>
      %131 = vector.broadcast %130 : vector<4x1xf32> to vector<4x256xf32>
      %132 = vector.broadcast %cst_58 : f32 to vector<4x256xf32>
      %133 = arith.select %129, %131, %132 : vector<4x256xi1>, vector<4x256xf32>
      %134 = arith.addf %126, %133 : vector<4x256xf32>
      %c0_59 = arith.constant 0 : index
      %c0_60 = arith.constant 0 : index
      %135 = vector.load %arg7[%c0_59, %c0_60] : memref<4x256xf32, #tpu.memory_space<vmem>>, vector<4x256xf32>
      %cst_61 = arith.constant 0.000000e+00 : f32
      %136 = vector.shape_cast %104 : vector<4x1xi1> to vector<4x1xi1>
      %137 = vector.broadcast %136 : vector<4x1xi1> to vector<4x256xi1>
      %138 = vector.broadcast %cst_61 : f32 to vector<4x256xf32>
      %139 = arith.select %137, %134, %138 : vector<4x256xi1>, vector<4x256xf32>
      %140 = arith.addf %135, %139 : vector<4x256xf32>
      %c0_62 = arith.constant 0 : index
      %c0_63 = arith.constant 0 : index
      %141 = vector.load %arg7[%c0_62, %c0_63] : memref<4x256xf32, #tpu.memory_space<vmem>>, vector<4x256xf32>
      tpu.vector_store %arg7[%c0_62, %c0_63], %140 {strides = array<i32>} : memref<4x256xf32, #tpu.memory_space<vmem>>, vector<4x256xf32>,
    }
    %c0_25 = arith.constant 0 : index
    %c0_26 = arith.constant 0 : index
    %69 = vector.load %arg7[%c0_25, %c0_26] : memref<4x256xf32, #tpu.memory_space<vmem>>, vector<4x256xf32>
    %70 = arith.mulf %31, %56 : f32
    %71 = vector.broadcast %70 : f32 to vector<4x256xf32>
    %72 = arith.mulf %69, %71 : vector<4x256xf32>
    %c0_27 = arith.constant 0 : index
    %c0_28 = arith.constant 0 : index
    %73 = vector.load %arg6[%c0_27, %c0_28] : memref<4x256xf32, #tpu.memory_space<vmem>>, vector<1x256xf32>
    %74 = vector.broadcast %73 : vector<1x256xf32> to vector<4x256xf32>
    %75 = arith.mulf %74, %72 : vector<4x256xf32>
    %c0_29 = arith.constant 0 : index
    %c0_30 = arith.constant 0 : index
    %76 = vector.load %arg8[%c0_29, %c0_30] : memref<16x256xf32, #tpu.memory_space<vmem>>, vector<4x256xf32>
    tpu.vector_store %arg8[%c0_29, %c0_30], %75 {strides = array<i32>} : memref<16x256xf32, #tpu.memory_space<vmem>>, vector<4x256xf32>,
    %c1_31 = arith.constant 1 : index
    %c0_32 = arith.constant 0 : index
    %77 = vector.load %arg6[%c1_31, %c0_32] : memref<4x256xf32, #tpu.memory_space<vmem>>, vector<1x256xf32>
    %78 = vector.broadcast %77 : vector<1x256xf32> to vector<4x256xf32>
    %79 = arith.mulf %78, %72 : vector<4x256xf32>
    %c4 = arith.constant 4 : index
    %c0_33 = arith.constant 0 : index
    %80 = vector.load %arg8[%c4, %c0_33] : memref<16x256xf32, #tpu.memory_space<vmem>>, vector<4x256xf32>
    tpu.vector_store %arg8[%c4, %c0_33], %79 {strides = array<i32>} : memref<16x256xf32, #tpu.memory_space<vmem>>, vector<4x256xf32>,
    %c2_34 = arith.constant 2 : index
    %c0_35 = arith.constant 0 : index
    %81 = vector.load %arg6[%c2_34, %c0_35] : memref<4x256xf32, #tpu.memory_space<vmem>>, vector<1x256xf32>
    %82 = vector.broadcast %81 : vector<1x256xf32> to vector<4x256xf32>
    %83 = arith.mulf %82, %72 : vector<4x256xf32>
    %c8 = arith.constant 8 : index
    %c0_36 = arith.constant 0 : index
    %84 = vector.load %arg8[%c8, %c0_36] : memref<16x256xf32, #tpu.memory_space<vmem>>, vector<4x256xf32>
    tpu.vector_store %arg8[%c8, %c0_36], %83 {strides = array<i32>} : memref<16x256xf32, #tpu.memory_space<vmem>>, vector<4x256xf32>,
    %c3_37 = arith.constant 3 : index
    %c0_38 = arith.constant 0 : index
    %85 = vector.load %arg6[%c3_37, %c0_38] : memref<4x256xf32, #tpu.memory_space<vmem>>, vector<1x256xf32>
    %86 = vector.broadcast %85 : vector<1x256xf32> to vector<4x256xf32>
    %87 = arith.mulf %86, %72 : vector<4x256xf32>
    %c12 = arith.constant 12 : index
    %c0_39 = arith.constant 0 : index
    %88 = vector.load %arg8[%c12, %c0_39] : memref<16x256xf32, #tpu.memory_space<vmem>>, vector<4x256xf32>
    tpu.vector_store %arg8[%c12, %c0_39], %87 {strides = array<i32>} : memref<16x256xf32, #tpu.memory_space<vmem>>, vector<4x256xf32>,
    %c0_40 = arith.constant 0 : index
    %c0_41 = arith.constant 0 : index
    %c0_42 = arith.constant 0 : index
    %89 = vector.load %arg4[%c0_40, %c0_41, %c0_42] : memref<1x256x4xf32, #tpu.memory_space<vmem>>, vector<1x256x4xf32>
    %90 = vector.shape_cast %89 : vector<1x256x4xf32> to vector<256x4xf32>
    %c0_43 = arith.constant 0 : index
    %c0_44 = arith.constant 0 : index
    %91 = vector.load %arg8[%c0_43, %c0_44] : memref<16x256xf32, #tpu.memory_space<vmem>>, vector<16x256xf32>
    %cst_45 = arith.constant dense<0.000000e+00> : vector<16x4xf32>
    %92 = tpu.matmul %91, %90, %cst_45 {dimension_numbers = #tpu.dot_dimension_numbers<[1], [0], [0], [1], [0, 0, 1, 1], [], []>} : vector<16x256xf32>, vector<256x4xf32>, vector<16x4xf32> -> vector<16x4xf32>
    %c0_46 = arith.constant 0 : index
    %c0_47 = arith.constant 0 : index
    %c0_48 = arith.constant 0 : index
    %93 = vector.load %arg5[%c0_46, %c0_47, %c0_48] : memref<1x16x4xf32, #tpu.memory_space<vmem>>, vector<1x16x4xf32>
    %94 = vector.shape_cast %93 : vector<1x16x4xf32> to vector<16x4xf32>
    %95 = vector.shape_cast %92 : vector<16x4xf32> to vector<1x16x4xf32>
    tpu.vector_store %arg5[%c0_46, %c0_47, %c0_48], %95 {strides = array<i32>} : memref<1x16x4xf32, #tpu.memory_space<vmem>>, vector<1x16x4xf32>,
    return
  }
  func.func @transform_0(%arg0: i32, %arg1: i32, %arg2: memref<6xi32, #tpu.memory_space<smem>>) -> (i32, i32) {
    %c0_i32 = arith.constant 0 : i32
    %c0_i32_0 = arith.constant 0 : i32
    %c0_i32_1 = arith.constant 0 : i32
    return %c0_i32, %c0_i32_0 : i32, i32
  }
  func.func @transform_1(%arg0: i32, %arg1: i32, %arg2: memref<6xi32, #tpu.memory_space<smem>>) -> (i32, i32, i32) {
    %0 = arith.index_cast %arg0 : i32 to index
    %1 = memref.load %arg2[%0] : memref<6xi32, #tpu.memory_space<smem>>
    %c0_i32 = arith.constant 0 : i32
    %c0_i32_0 = arith.constant 0 : i32
    return %1, %c0_i32, %arg1 : i32, i32, i32
  }
  func.func @transform_2(%arg0: i32, %arg1: i32, %arg2: memref<6xi32, #tpu.memory_space<smem>>) -> (i32, i32, i32) {
    %c0_i32 = arith.constant 0 : i32
    %c0_i32_0 = arith.constant 0 : i32
    return %arg0, %c0_i32, %arg1 : i32, i32, i32
  }
}

</mosaic_0001>

<bundles_post_ra>
// kernel: tpu_custom_call.1
= control target key start
LH: loop header
LB: loop body
LE: loop exit
PB: predicated region body
PF: predicated region fallthrough
CT: control target
= control target key end

     0   :  { %s918_s15 = smov [#allocation6]   ;;  %s1131_s0 = inlined_call_operand.vmem [shape: s32[6], index: 0, kind: input, shape index: {}]   ;;  %s1132_s1 = inlined_call_operand.vmem [shape: f32[4,6], index: 1, kind: input, shape index: {}]   ;;  %s1133_s2 = inlined_call_operand.vmem [shape: f32[2,256,4], index: 2, kind: input, shape index: {}]   ;;  %s1134_s3 = inlined_call_operand.vmem [shape: f32[6,16,4], index: 3, kind: output, shape index: {}]  }
   0x1   :  { %s9_s14 = sshll.u32 %s1131_s0, 4  ;;  %s10_s14 = int_to_ptr.vmem [resolvable:$true] %s9_s14 }
   0x2   :  { %12 = dma.vmem_to_smem %s10_s14, 16, %s918_s15, [#allocation5] }
   0x3   :  { %892 = dma.done.wait [#allocation5], 16 }
   0x4   :  { %893 = vsyncadd [#allocation5], 4294967280 }
   0x5   :  { %15 = sfence }
   0x6   :  { %16 = vsyncpa [#allocation8], 0  ;;  %s946_s16 = smov 0   ;;  %s948_s17 = smov 0  }
   0x7   :  { %s950_s18 = smov 0  }
   0x8 LB: > { %s684_s0 = sadd.s32 4294967295, %s908_s18   ;;  %s34_s19 = sadd.s32 1, %s904_s17  ;;  %s908_s18 = sphi %s950_s18, %s22_s18   ;;  %s904_s17 = sphi %s948_s17, %s1136_s17   ;;  %s900_s16 = sphi %s946_s16, %s1135_s16  }
   0x9   : > { %p36_p0 = scmp.ge.s32.totalorder %s34_s19, 6  ;;  %p686_p1 = scmp.ge.s32.totalorder %s908_s18, 1 }
   0xa   : > { %p118_p2 = scmp.lt.s32.totalorder %s908_s18, 7  ;;  %p792_p4 = scmp.eq.s32.totalorder %s684_s0, 0 }
   0xb   : > { %s1138_s19 = smov (%p36_p0, %s34_s19), 0  ;;  %s130_s22 = sshll.u32 %s1132_s1, 4  ;;  %s131_s22 = int_to_ptr.vmem [resolvable:$true] %s130_s22 }
   0xc   : > { %p119_p3 = pnand %p686_p1, %p118_p2  ;;  %s919_s23 = smov [#allocation7]  }
   0xe   : > { %p788_p5 = pneg %p119_p3  ;;  %156 = sbr.rel (%p119_p3) target bundleno = 485 (0x1e5), region = 28 }
  0x10   : > { %p789_p6 = pnand %p792_p4, %p788_p5 }
  0x12   : > { %791 = dma.vmem_to_smem (!%p789_p6), %s131_s22, 64, %s919_s23, [#allocation8]  }
  0x13   : > { %895 = dma.done.wait (%p792_p4), [#allocation8], 64  }
  0x14   : > { %897 = vsyncadd (%p792_p4), [#allocation8], 4294967232 }
  0x15   : > { %163 = sfence }
  0x16   : > { %s187_s24 = sld [smem:[#allocation6 + %s900_s16]]  ;;  %p197_p7 = scmp.lt.s32.totalorder %s900_s16, 5  ;;  %v205_v0 = vlaneseq  ;;  %v921_v1 = vmov 16.0   ;;  %v922_v39 = vmov 0.0  }
  0x17   : > { %s968_s25 = sld [smem:[#allocation7 + %s900_s16]]  ;;  %s231_s26 = sshra.s32 %s900_s16, 7  ;;  %839 = vrcp.f32 %v921_v1  ;;  %284 = vst [vmem:[#allocation2] sm:$0xff] %v922_v39 }
  0x18   : > { %s198_s27 = scalar_select %p197_p7, %s900_s16, 5  ;;  %v206_v2 = vand.u32 127, %v205_v0  ;;  %v1007_v40 = vshrl.u32 %v205_v0, 7 }
  0x19   : > { %s704_s28 = sshll.u32 %s231_s26, 7  ;;  %s236_s29 = sand.u32 127, %s900_s16 }
  0x1a   : > { %s703_s30 = sshll.u32 %s198_s27, 4  ;;  %s705_s4 = sadd.s32 128, %s704_s28  ;;  %v207_v5 = vadd.s32 128, %v206_v2  ;;  %v208_v8 = vcvt.s32.f32 %v206_v2  ;;  %v229_v41 = vcvt.s32.f32 %v1007_v40 }
  0x1b   : > { %s973_s7 = scalar_lea.vmem %s1134_s3, %s703_s30  ;;  %s237_s8 = sadd.s32 %s705_s4, %s236_s29 }
  0x1c   : > { %p188_p8 = scmp.lt.s32.totalorder %s187_s24, 1  ;;  %s975_s9 = sld [smem:[#allocation7 + %s237_s8]]  ;;  %v209_v9 = vcvt.s32.f32 %v207_v5 }
  0x1d   : > { %s707_s10 = sadd.s32 256, %s704_s28  ;;  %s709_s11 = sadd.s32 384, %s704_s28  ;;  %v840_v3 = vpop.eup %839 }
  0x1e   : > { %s1140_s24 = smov (!%p188_p8, %s187_s24), 1  ;;  %s241_s12 = sadd.s32 %s707_s10, %s236_s29  ;;  %v211_v4 = vmul.f32 16.0, %v840_v3  ;;  %vm215_vm0 = vweird.f32 %v840_v3 }
  0x1f   : > { %s245_s13 = sadd.s32 %s709_s11, %s236_s29  ;;  %s702_s14 = sshll.u32 %s1140_s24, 8 }
  0x20   : > { %s977_s15 = sld [smem:[#allocation7 + %s241_s12]]  ;;  %s982_s20 = scalar_lea.vmem %s1133_s2, %s702_s14  ;;  %v212_v6 = vsub.f32 1.0, %v211_v4 }
  0x21   : > { %s246_s21 = sld [smem:[#allocation7 + %s245_s13]]  ;;  %s920_s27 = smov 1.0  }
  0x22   : > { %s247_s22 = smul.f32 0.5, %s975_s9  ;;  %v213_v7 = vmul.f32 %v840_v3, %v212_v6  ;;  %s1022_s14 = smov 0  }
  0x24   : > { %v214_v11 = vadd.f32 %v840_v3, %v213_v7  ;;  %v279_v44 = vstv %s247_s22 }
  0x26   : > { %v216_v12 = vsel %vm215_vm0, %v840_v3, %v214_v11 }
  0x27   : > { %s248_s23 = smul.f32 0.5, %s246_s21  ;;  %v217_v13 = vmul.f32 %v216_v12, %v208_v8  ;;  %v218_v14 = vmul.f32 %v216_v12, %v209_v9 }
  0x29   : > { %s249_s26 = ssub.f32 %s248_s23, %s247_s22  ;;  %vm750_vm1 = vcmp.lt.s32.totalorder %v217_v13, 0  ;;  %v751_v15 = vceil.f32 %v217_v13  ;;  %v752_v16 = vfloor.f32 %v217_v13  ;;  %vm755_vm2 = vcmp.lt.s32.totalorder %v218_v14, 0 }
  0x2a   : > { %v756_v17 = vceil.f32 %v218_v14  ;;  %v757_v18 = vfloor.f32 %v218_v14 }
  0x2b   : > { %s250_s30 = smax.f32 %s920_s27, %s249_s26  ;;  %v753_v20 = vsel %vm750_vm1, %v751_v15, %v752_v16 }
  0x2c   : > { %s988_s28 = smul.f32 0.25, %s250_s30  ;;  %v754_v22 = vcvt.f32.s32 %v753_v20  ;;  %v758_v23 = vsel %vm755_vm2, %v756_v17, %v757_v18 }
  0x2d   : > { %v759_v25 = vcvt.f32.s32 %v758_v23 }
  0x2e   : > { %p760_p9 = scmp.lt.s32.totalorder %s988_s28, 0  ;;  %s761_s24 = sceil.f32 %s988_s28  ;;  %v997_v28 = vcvt.s32.f32 %v754_v22  ;;  %v277_v42 = vstv %s988_s28 }
  0x2f   : > { %s762_s29 = sfloor.f32 %s988_s28  ;;  %v999_v29 = vcvt.s32.f32 %v759_v25  ;;  %v278_v43 = vmul.f32 %v277_v42, %v229_v41 }
  0x30   : > { %s1142_s24 = smov (!%p760_p9, %s761_s24), %s762_s29  ;;  %v223_v31 = vmul.f32 16.0, %v997_v28 }
  0x31   : > { %s764_s4 = scvt.f32.s32 %s1142_s24  ;;  %v224_v33 = vmul.f32 16.0, %v999_v29  ;;  %v280_v45 = vadd.f32 %v279_v44, %v278_v43 }
  0x32   : > { %v1003_v35 = vsub.f32 %v208_v8, %v223_v31 }
  0x33   : > { %s253_s5 = scvt.s32.f32 %s764_s4  ;;  %v1005_v36 = vsub.f32 %v209_v9, %v224_v33 }
  0x35   : > { %p254_p10 = scmp.gt.f32.partialorder %s988_s28, %s253_s5 }
  0x37   : > { %s255_s6 = scalar_select %p254_p10, 1, 0 }
  0x39   : > { %s256_s8 = sadd.s32 %s764_s4, %s255_s6 }
  0x3a   : > { %p257_p11 = scmp.gt.s32.totalorder %s256_s8, 1 }
  0x3c   : > { %s1144_s8 = smov (!%p257_p11, %s256_s8), 1 }
  0x3d   : > { %s259_s10 = scvt.s32.f32 %s1144_s8 }
  0x3f   : > { %v260_v10 = vstv %s259_s10 }
  0x40   : > { %841 = vrcp.f32 %v260_v10  ;;  %vm266_vm3 = vweird.f32 %v260_v10  ;;  %v272_v24 = vand.u32 2147483648, %v260_v10  ;;  %v270_v27 = vand.u32 2147483647, %v260_v10 }
  0x42   : > { %v273_v32 = vor.u32 1.1754944e-38, %v272_v24  ;;  %vm271_vm6 = vcmp.eq.f32.partialorder %v270_v27, 8.507059e+37 }
  0x46   : > { %v842_v19 = vpop.eup %841 }
  0x47   : > { %v262_v21 = vmul.f32 %v842_v19, %v260_v10  ;;  %vm267_vm4 = vweird.f32 %v842_v19 }
  0x48   : > { %vm268_vm5 = vmor %vm266_vm3, %vm267_vm4 }
  0x49   : > { %v263_v26 = vsub.f32 1.0, %v262_v21 }
  0x4b   : > { %v264_v30 = vmul.f32 %v842_v19, %v263_v26 }
  0x4d   : > { %v265_v34 = vadd.f32 %v842_v19, %v264_v30 }
  0x4f   : > { %v269_v37 = vsel %vm268_vm5, %v842_v19, %v265_v34 }
  0x50   : > { %v274_v38 = vsel %vm271_vm6, %v273_v32, %v269_v37 }
  0x51   : > { %765 = vpush %v274_v38 }
  0x82   : > { %s1015_s11 = spop %765 }
  0x83   : > { %s1019_s12 = smul.f32 %s1015_s11, %s988_s28 }
  0x85   : > { %s281_s13 = smul.f32 0.5, %s1019_s12 }
  0x87   : > { %v282_v46 = vstv %s281_s13 }
  0x88   : > { %v283_v47 = vadd.f32 %v282_v46, %v280_v45 }
  0x89 LB: >> { %s291_s9 = scvt.s32.f32 %s912_s14  ;;  %vm325_vm15 = vcmask 1043456   ;;  %v317_v6 = vld [vmem:[#allocation2] sm:$0xff]  ;;  %s288_s14 = sadd.s32 1, %s912_s14   ;;  %s912_s14 = sphi %s1022_s14, %s288_s14  }
  0x8a   : >> { %p287_p12 = scmp.ge.s32.totalorder %s288_s14, %s1144_s8 }
  0x8b   : >> { %s292_s16 = smul.f32 %s291_s9, %s1019_s12  ;;  %367 = vst [vmem:[#allocation3] sm:$0xff] (%p287_p12), %v922_v39  ;;  %s1064_s10 = smov (%p287_p12), 0  }
  0x8c   : > { %s330_s0 = smul.f32 (%p287_p12), 0.5, %s968_s25 }
  0x8d   : >> { %v293_v48 = vstv %s292_s16  ;;  %s331_s21 = smul.f32 (%p287_p12), 0.5, %s977_s15 }
  0x8e   : >> { %v294_v49 = vadd.f32 %v293_v48, %v283_v47  ;;  %v362_v23 = vstv (%p287_p12), %s330_s0 }
  0x8f   : > { %s332_s22 = ssub.f32 (%p287_p12), %s331_s21, %s330_s0 }
  0x90   : >> { %v298_v50 = vmax.f32 %v294_v49, 0.0  ;;  %vm295_vm10 = vcmp.ge.f32.partialorder %v294_v49, -1.0  ;;  %vm296_vm11 = vcmp.le.f32.partialorder %v294_v49, 16.0 }
  0x91   : >> { %vm297_vm14 = vmand %vm295_vm10, %vm296_vm11  ;;  %s333_s23 = smax.f32 (%p287_p12), %s920_s27, %s332_s22 }
  0x92   : >> { %v299_v51 = vmin.f32 %v298_v50, 16.0  ;;  %s1043_s26 = smul.f32 (%p287_p12), 0.25, %s333_s23 }
  0x94   : >> { %vm767_vm7 = vcmp.lt.s32.totalorder %v299_v51, 0  ;;  %v768_v52 = vceil.f32 %v299_v51  ;;  %v769_v53 = vfloor.f32 %v299_v51  ;;  %p772_p13 = scmp.lt.s32.totalorder (%p287_p12), %s1043_s26, 0  ;;  %s773_s30 = sceil.f32 (%p287_p12), %s1043_s26  ;;  %v360_v21 = vstv (%p287_p12), %s1043_s26 }
  0x95   : > { %s774_s28 = sfloor.f32 (%p287_p12), %s1043_s26  ;;  %v361_v22 = vmul.f32 (%p287_p12), %v360_v21, %v229_v41 }
  0x96   : >> { %v770_v54 = vsel %vm767_vm7, %v768_v52, %v769_v53 }
  0x97   : >> { %v771_v55 = vcvt.f32.s32 %v770_v54  ;;  %v363_v24 = vadd.f32 (%p287_p12), %v362_v23, %v361_v22 }
  0x99   : >> { %v301_v56 = vcvt.s32.f32 %v771_v55 }
  0x9b   : >> { %v302_v57 = vmin.f32 %v301_v56, 15.0 }
  0x9d   : >> { %v303_v58 = vadd.f32 1.0, %v302_v57  ;;  %v305_v59 = vsub.f32 %v299_v51, %v302_v57  ;;  %vm306_vm8 = vcmp.eq.f32.partialorder %v997_v28, %v302_v57  ;;  %vm307_vm9 = vcmp.eq.f32.partialorder %v999_v29, %v302_v57 }
  0x9f   : >> { %v304_v60 = vmin.f32 %v303_v58, 15.0  ;;  %v308_v61 = vsub.f32 1.0, %v305_v59 }
  0xa1   : >> { %v309_v62 = vsel %vm306_vm8, %v308_v61, 0.0  ;;  %v310_v63 = vsel %vm307_vm9, %v308_v61, 0.0  ;;  %vm311_vm12 = vcmp.eq.f32.partialorder %v997_v28, %v304_v60  ;;  %vm312_vm13 = vcmp.eq.f32.partialorder %v999_v29, %v304_v60 }
  0xa2   : >> { %v313_v0 = vsel %vm311_vm12, %v305_v59, 0.0  ;;  %v314_v1 = vsel %vm312_vm13, %v305_v59, 0.0 }
  0xa3   : >> { %v315_v2 = vadd.f32 %v313_v0, %v309_v62  ;;  %v316_v3 = vadd.f32 %v314_v1, %v310_v63 }
  0xa5   : >> { %v320_v4 = vsel %vm297_vm14, %v315_v2, 0.0  ;;  %v321_v5 = vsel %vm297_vm14, %v316_v3, 0.0 }
  0xa6   : >> { %v324_v7 = vrot.slane %v321_v5, 4 }
  0xa7   : > { %290 = sbr.rel (!%p287_p12) target bundleno = 137 (0x89), region = 80 }
  0xa8   : >> { %v326_v8 = vsel %vm325_vm15, %v320_v4, %v324_v7 }
  0xa9   : >> { %v328_v9 = vadd.f32 %v326_v8, %v317_v6 }
  0xab   : >> { %329 = vst [vmem:[#allocation2] sm:$0xff] %v328_v9 }
  0xac   : > { %s1146_s30 = smov (!%p772_p13, %s773_s30), %s774_s28 }
  0xad   : > { %s776_s24 = scvt.f32.s32 %s1146_s30 }
  0xaf   : > { %s336_s29 = scvt.s32.f32 %s776_s24 }
  0xb1   : > { %p337_p0 = scmp.gt.f32.partialorder %s1043_s26, %s336_s29 }
  0xb3   : > { %s338_s4 = scalar_select %p337_p0, 1, 0 }
  0xb5   : > { %s339_s5 = sadd.s32 %s776_s24, %s338_s4 }
  0xb6   : > { %p340_p1 = scmp.gt.s32.totalorder %s339_s5, 1 }
  0xb8   : > { %s1148_s5 = smov (!%p340_p1, %s339_s5), 1 }
  0xb9   : > { %s342_s15 = scvt.s32.f32 %s1148_s5 }
  0xbb   : > { %v343_v10 = vstv %s342_s15 }
  0xbc   : > { %843 = vrcp.f32 %v343_v10  ;;  %v355_v13 = vand.u32 2147483648, %v343_v10  ;;  %vm349_vm0 = vweird.f32 %v343_v10  ;;  %v353_v15 = vand.u32 2147483647, %v343_v10 }
  0xbe   : > { %v356_v17 = vor.u32 1.1754944e-38, %v355_v13  ;;  %vm354_vm3 = vcmp.eq.f32.partialorder %v353_v15, 8.507059e+37 }
  0xc2   : > { %v844_v11 = vpop.eup %843 }
  0xc3   : > { %v345_v12 = vmul.f32 %v844_v11, %v343_v10  ;;  %vm350_vm1 = vweird.f32 %v844_v11 }
  0xc4   : > { %vm351_vm2 = vmor %vm349_vm0, %vm350_vm1 }
  0xc5   : > { %v346_v14 = vsub.f32 1.0, %v345_v12 }
  0xc7   : > { %v347_v16 = vmul.f32 %v844_v11, %v346_v14 }
  0xc9   : > { %v348_v18 = vadd.f32 %v844_v11, %v347_v16 }
  0xcb   : > { %v352_v19 = vsel %vm351_vm2, %v844_v11, %v348_v18 }
  0xcc   : > { %v357_v20 = vsel %vm354_vm3, %v356_v17, %v352_v19 }
  0xcd   : > { %777 = vpush %v357_v20 }
  0xfe   : > { %s1057_s27 = spop %777 }
  0xff   : > { %s1061_s6 = smul.f32 %s1057_s27, %s1043_s26 }
 0x101   : > { %s364_s8 = smul.f32 0.5, %s1061_s6 }
 0x103   : > { %v365_v25 = vstv %s364_s8 }
 0x104   : > { %v366_v26 = vadd.f32 %v365_v25, %v363_v24 }
 0x105 LB: >> { %s374_s25 = scvt.s32.f32 %s916_s10  ;;  %v400_v51 = vld [vmem:[#allocation3] sm:$0xff]  ;;  %s371_s10 = sadd.s32 1, %s916_s10   ;;  %s916_s10 = sphi %s1064_s10, %s371_s10  }
 0x106   : >> { %p370_p2 = scmp.ge.s32.totalorder %s371_s10, %s1148_s5 }
 0x107   : >> { %s375_s12 = smul.f32 %s374_s25, %s1061_s6  ;;  %v508_v55 = vld [vmem:[%s982_s20 + $0x78] sm:$0xff] (%p370_p2)  ;;  %v507_v57 = vld [vmem:[%s982_s20 + $0x70] sm:$0xff] (%p370_p2)  ;;  %v506_v59 = vld [vmem:[%s982_s20 + $0x68] sm:$0xff] (%p370_p2)  ;;  %vm575_vm12 = vcmask (%p370_p2), 31744  }
 0x108   : > { %v524_v56 = vld [vmem:[%s982_s20 + $0xf8] sm:$0xff] (%p370_p2)  ;;  %718 = vmatpush.msra.mxu2 (%p370_p2), %v508_v55  ;;  %v523_v58 = vld [vmem:[%s982_s20 + $0xf0] sm:$0xff] (%p370_p2)  ;;  %v522_v60 = vld [vmem:[%s982_s20 + $0xe8] sm:$0xff] (%p370_p2)  ;;  %529 = vmatpush.msra.mxu0 (%p370_p2), %v508_v55  ;;  %s414_s13 = smul.f32 (%p370_p2), %s1057_s27, %s1015_s11 }
 0x109   : >> { %v376_v27 = vstv %s375_s12  ;;  %734 = vmatpush.msra.mxu3 (%p370_p2), %v524_v56  ;;  %552 = vmatpush.msra.mxu1 (%p370_p2), %v524_v56  ;;  %v504_v61 = vld [vmem:[%s982_s20 + $0x58] sm:$0xff] (%p370_p2)  ;;  %v503_v63 = vld [vmem:[%s982_s20 + $0x50] sm:$0xff] (%p370_p2)  ;;  %v502_v2 = vld [vmem:[%s982_s20 + $0x48] sm:$0xff] (%p370_p2) }
 0x10a   : >> { %v377_v28 = vadd.f32 %v376_v27, %v366_v26  ;;  %719 = vmatpush.msra.mxu2 (%p370_p2), %v507_v57  ;;  %530 = vmatpush.msra.mxu0 (%p370_p2), %v507_v57  ;;  %v520_v62 = vld [vmem:[%s982_s20 + $0xd8] sm:$0xff] (%p370_p2)  ;;  %v519_v0 = vld [vmem:[%s982_s20 + $0xd0] sm:$0xff] (%p370_p2)  ;;  %v415_v1 = vstv (%p370_p2), %s414_s13  ;;  %v518_v3 = vld [vmem:[%s982_s20 + $0xc8] sm:$0xff] (%p370_p2) }
 0x10b   : > { %735 = vmatpush.msra.mxu3 (%p370_p2), %v523_v58  ;;  %553 = vmatpush.msra.mxu1 (%p370_p2), %v523_v58  ;;  %v501_v6 = vld [vmem:[%s982_s20 + $0x40] sm:$0xff] (%p370_p2)  ;;  %v500_v8 = vld [vmem:[%s982_s20 + $0x38] sm:$0xff] (%p370_p2)  ;;  %v499_v10 = vld [vmem:[%s982_s20 + $0x30] sm:$0xff] (%p370_p2) }
 0x10c   : >> { %v381_v29 = vmax.f32 %v377_v28, 0.0  ;;  %vm378_vm7 = vcmp.ge.f32.partialorder %v377_v28, -1.0  ;;  %vm379_vm8 = vcmp.le.f32.partialorder %v377_v28, 16.0  ;;  %720 = vmatpush.msra.mxu2 (%p370_p2), %v506_v59  ;;  %531 = vmatpush.msra.mxu0 (%p370_p2), %v506_v59  ;;  %v517_v7 = vld [vmem:[%s982_s20 + $0xc0] sm:$0xff] (%p370_p2)  ;;  %v516_v9 = vld [vmem:[%s982_s20 + $0xb8] sm:$0xff] (%p370_p2)  ;;  %v515_v11 = vld [vmem:[%s982_s20 + $0xb0] sm:$0xff] (%p370_p2) }
 0x10d   : >> { %vm380_vm11 = vmand %vm378_vm7, %vm379_vm8  ;;  %736 = vmatpush.msra.mxu3 (%p370_p2), %v522_v60  ;;  %554 = vmatpush.msra.mxu1 (%p370_p2), %v522_v60  ;;  %v498_v12 = vld [vmem:[%s982_s20 + $0x28] sm:$0xff] (%p370_p2)  ;;  %v497_v14 = vld [vmem:[%s982_s20 + $0x20] sm:$0xff] (%p370_p2) }
 0x10e   : >> { %v382_v30 = vmin.f32 %v381_v29, 16.0  ;;  %v514_v13 = vld [vmem:[%s982_s20 + $0xa8] sm:$0xff] (%p370_p2)  ;;  %v513_v15 = vld [vmem:[%s982_s20 + $0xa0] sm:$0xff] (%p370_p2)  ;;  %v496_v21 = vld [vmem:[%s982_s20 + $0x18] sm:$0xff] (%p370_p2) }
 0x10f   : > { %v417_v16 = vld [vmem:[#allocation2] ss:$4 sm:$0x3] (%p370_p2)  ;;  %v512_v22 = vld [vmem:[%s982_s20 + $0x98] sm:$0xff] (%p370_p2)  ;;  %v495_v26 = vld [vmem:[%s982_s20 + $0x10] sm:$0xff] (%p370_p2) }
 0x110   : >> { %vm779_vm4 = vcmp.lt.s32.totalorder %v382_v30, 0  ;;  %v780_v31 = vceil.f32 %v382_v30  ;;  %v781_v32 = vfloor.f32 %v382_v30  ;;  %v419_v19 = vperm.slane (%p370_p2), %v417_v16, 0  ;;  %v434_v23 = vld [vmem:[#allocation2 + $0x1] ss:$4 sm:$0x3] (%p370_p2)  ;;  %v511_v27 = vld [vmem:[%s982_s20 + $0x90] sm:$0xff] (%p370_p2) }
 0x111   : > { %v420_v20 = vperm.slane (%p370_p2), %v417_v16, 1  ;;  %v436_v28 = vperm.slane (%p370_p2), %v434_v23, 0  ;;  %v437_v29 = vperm.slane (%p370_p2), %v434_v23, 1 }
 0x112   : >> { %v782_v33 = vsel %vm779_vm4, %v780_v31, %v781_v32  ;;  %v510_v31 = vld [vmem:[%s982_s20 + $0x88] sm:$0xff] (%p370_p2)  ;;  %v493_v32 = vld [vmem:[%s982_s20] sm:$0xff] (%p370_p2) }
 0x113   : >> { %v783_v34 = vcvt.f32.s32 %v782_v33  ;;  %v509_v33 = vld [vmem:[%s982_s20 + $0x80] sm:$0xff] (%p370_p2) }
 0x115   : >> { %v384_v37 = vcvt.s32.f32 %v783_v34 }
 0x117   : >> { %v385_v38 = vmin.f32 %v384_v37, 15.0 }
 0x119   : >> { %v386_v39 = vadd.f32 1.0, %v385_v38  ;;  %v388_v40 = vsub.f32 %v382_v30, %v385_v38  ;;  %vm389_vm5 = vcmp.eq.f32.partialorder %v1003_v35, %v385_v38  ;;  %vm390_vm6 = vcmp.eq.f32.partialorder %v1005_v36, %v385_v38  ;;  %v494_v30 = vld [vmem:[%s982_s20 + $0x8] sm:$0xff] (%p370_p2) }
 0x11b   : >> { %v387_v41 = vmin.f32 %v386_v39, 15.0  ;;  %v391_v42 = vsub.f32 1.0, %v388_v40 }
 0x11d   : >> { %v392_v43 = vsel %vm389_vm5, %v391_v42, 0.0  ;;  %v393_v44 = vsel %vm390_vm6, %v391_v42, 0.0  ;;  %vm394_vm9 = vcmp.eq.f32.partialorder %v1003_v35, %v387_v41  ;;  %vm395_vm10 = vcmp.eq.f32.partialorder %v1005_v36, %v387_v41  ;;  %v505_v35 = vld [vmem:[%s982_s20 + $0x60] sm:$0xff] (%p370_p2) }
 0x11e   : >> { %v396_v45 = vsel %vm394_vm9, %v388_v40, 0.0  ;;  %v397_v46 = vsel %vm395_vm10, %v388_v40, 0.0  ;;  %v521_v36 = vld [vmem:[%s982_s20 + $0xe0] sm:$0xff] (%p370_p2)  ;;  %721 = vmatpush.msra.mxu2 (%p370_p2), %v505_v35  ;;  %532 = vmatpush.msra.mxu0 (%p370_p2), %v505_v35  ;;  %v456_v40 = vld [vmem:[#allocation2 + $0x2] ss:$4 sm:$0x3] (%p370_p2) }
 0x11f   : >> { %v398_v47 = vadd.f32 %v396_v45, %v392_v43  ;;  %v399_v48 = vadd.f32 %v397_v46, %v393_v44  ;;  %737 = vmatpush.msra.mxu3 (%p370_p2), %v521_v36  ;;  %555 = vmatpush.msra.mxu1 (%p370_p2), %v521_v36  ;;  %v458_v43 = vperm.slane (%p370_p2), %v456_v40, 0  ;;  %v459_v44 = vperm.slane (%p370_p2), %v456_v40, 1 }
 0x120   : > { %722 = vmatpush.msra.mxu2 (%p370_p2), %v504_v61  ;;  %533 = vmatpush.msra.mxu0 (%p370_p2), %v504_v61 }
 0x121   : >> { %v403_v49 = vsel %vm380_vm11, %v398_v47, 0.0  ;;  %v404_v50 = vsel %vm380_vm11, %v399_v48, 0.0  ;;  %738 = vmatpush.msra.mxu3 (%p370_p2), %v520_v62  ;;  %556 = vmatpush.msra.mxu1 (%p370_p2), %v520_v62 }
 0x122   : >> { %v407_v52 = vrot.slane %v404_v50, 4  ;;  %723 = vmatpush.msra.mxu2 (%p370_p2), %v503_v63  ;;  %534 = vmatpush.msra.mxu0 (%p370_p2), %v503_v63 }
 0x123   : > { %373 = sbr.rel (!%p370_p2) target bundleno = 261 (0x105), region = 91  ;;  %739 = vmatpush.msra.mxu3 (%p370_p2), %v519_v0  ;;  %557 = vmatpush.msra.mxu1 (%p370_p2), %v519_v0 }
 0x124   : >> { %v409_v53 = vsel %vm325_vm15, %v403_v49, %v407_v52  ;;  %724 = vmatpush.msra.mxu2 (%p370_p2), %v502_v2  ;;  %535 = vmatpush.msra.mxu0 (%p370_p2), %v502_v2  ;;  %v472_v49 = vld [vmem:[#allocation2 + $0x3] ss:$4 sm:$0x3] (%p370_p2) }
 0x125   : >> { %v411_v54 = vadd.f32 %v409_v53, %v400_v51  ;;  %740 = vmatpush.msra.mxu3 (%p370_p2), %v518_v3  ;;  %558 = vmatpush.msra.mxu1 (%p370_p2), %v518_v3  ;;  %v474_v51 = vperm.slane (%p370_p2), %v472_v49, 0  ;;  %v475_v52 = vperm.slane (%p370_p2), %v472_v49, 1 }
 0x126   : > { %725 = vmatpush.msra.mxu2 (%p370_p2), %v501_v6  ;;  %536 = vmatpush.msra.mxu0 (%p370_p2), %v501_v6 }
 0x127   : >> { %412 = vst [vmem:[#allocation3] sm:$0xff] %v411_v54  ;;  %741 = vmatpush.msra.mxu3 (%p370_p2), %v517_v7  ;;  %559 = vmatpush.msra.mxu1 (%p370_p2), %v517_v7 }
 0x128   : > { %726 = vmatpush.msra.mxu2 %v500_v8  ;;  %537 = vmatpush.msra.mxu0 %v500_v8 }
 0x129   : > { %742 = vmatpush.msra.mxu3 %v516_v9  ;;  %560 = vmatpush.msra.mxu1 %v516_v9 }
 0x12a   : > { %727 = vmatpush.msra.mxu2 %v499_v10  ;;  %538 = vmatpush.msra.mxu0 %v499_v10 }
 0x12b   : > { %743 = vmatpush.msra.mxu3 %v515_v11  ;;  %561 = vmatpush.msra.mxu1 %v515_v11 }
 0x12c   : > { %728 = vmatpush.msra.mxu2 %v498_v12  ;;  %539 = vmatpush.msra.mxu0 %v498_v12 }
 0x12d   : > { %744 = vmatpush.msra.mxu3 %v514_v13  ;;  %562 = vmatpush.msra.mxu1 %v514_v13 }
 0x12e   : > { %v413_v4 = vld [vmem:[#allocation3] sm:$0xff]  ;;  %729 = vmatpush.msra.mxu2 %v497_v14  ;;  %540 = vmatpush.msra.mxu0 %v497_v14 }
 0x12f   : > { %v1096_v5 = vmul.f32 %v415_v1, %v413_v4  ;;  %745 = vmatpush.msra.mxu3 %v513_v15  ;;  %563 = vmatpush.msra.mxu1 %v513_v15 }
 0x130   : > { %730 = vmatpush.msra.mxu2 %v496_v21  ;;  %541 = vmatpush.msra.mxu0 %v496_v21 }
 0x131   : > { %424 = vst [vmem:[#allocation1] ss:$2 sm:$0xff] %v1096_v5  ;;  %746 = vmatpush.msra.mxu3 %v512_v22  ;;  %564 = vmatpush.msra.mxu1 %v512_v22 }
 0x132   : > { %731 = vmatpush.msra.mxu2 %v495_v26  ;;  %542 = vmatpush.msra.mxu0 %v495_v26 }
 0x133   : > { %747 = vmatpush.msra.mxu3 %v511_v27  ;;  %565 = vmatpush.msra.mxu1 %v511_v27 }
 0x134   : > { %732 = vmatpush.msra.mxu2 %v494_v30  ;;  %543 = vmatpush.msra.mxu0 %v494_v30 }
 0x135   : > { %748 = vmatpush.msra.mxu3 %v510_v31  ;;  %566 = vmatpush.msra.mxu1 %v510_v31 }
 0x136   : > { %733 = vmatpush.msra.mxu2 %v493_v32  ;;  %544 = vmatpush.msra.mxu0 %v493_v32 }
 0x137   : > { %749 = vmatpush.msra.mxu3 %v509_v33  ;;  %567 = vmatpush.msra.mxu1 %v509_v33 }
 0x138   : > { %v425_v17 = vld.sshfl [vmem:[#allocation1] sm:$0xff pattern:$0x75316420]  ;;  %v426_v18 = vld.sshfl [vmem:[#allocation1 + $0x8] sm:$0xff pattern:$0x75316420] }
 0x139   : > { %440 = vst [vmem:[#allocation1] ss:$2 sm:$0xff] %v1096_v5  ;;  %v429_v24 = vmul.f32 %v425_v17, %v419_v19  ;;  %v430_v25 = vmul.f32 %v426_v18, %v420_v20 }
 0x13b   : > { %431 = vst [vmem:[#allocation4 + $0x10] sm:$0xf] %v429_v24 }
 0x13c   : > { %432 = vst [vmem:[#allocation4] sm:$0xf] %v430_v25 }
 0x140   : > { %v441_v34 = vld.sshfl [vmem:[#allocation1] sm:$0xff pattern:$0x75316420]  ;;  %v442_v37 = vld.sshfl [vmem:[#allocation1 + $0x8] sm:$0xff pattern:$0x75316420] }
 0x141   : > { %462 = vst [vmem:[#allocation1] ss:$2 sm:$0xff] %v1096_v5  ;;  %v445_v38 = vmul.f32 %v441_v34, %v436_v28  ;;  %v446_v39 = vmul.f32 %v442_v37, %v437_v29 }
 0x143   : > { %v449_v41 = vrot.slane %v445_v38, 4  ;;  %v450_v42 = vrot.slane %v446_v39, 4 }
 0x145   : > { %453 = vst [vmem:[#allocation4 + $0x10] sm:$0xf0] %v449_v41 }
 0x146   : > { %454 = vst [vmem:[#allocation4] sm:$0xf0] %v450_v42 }
 0x148   : > { %v463_v45 = vld.sshfl [vmem:[#allocation1] sm:$0xff pattern:$0x75316420]  ;;  %v464_v46 = vld.sshfl [vmem:[#allocation1 + $0x8] sm:$0xff pattern:$0x75316420] }
 0x149   : > { %v467_v47 = vmul.f32 %v463_v45, %v458_v43  ;;  %478 = vst [vmem:[#allocation1] ss:$2 sm:$0xff] %v1096_v5  ;;  %v468_v48 = vmul.f32 %v464_v46, %v459_v44 }
 0x14b   : > { %469 = vst [vmem:[#allocation4 + $0x18] sm:$0xf] %v467_v47 }
 0x14c   : > { %470 = vst [vmem:[#allocation4 + $0x8] sm:$0xf] %v468_v48  ;;  %v525_v50 = vld [vmem:[#allocation4 + $0x10] sm:$0xff] }
 0x14d   : > { %545 = vmatmul.f32.vlgmr.msra.gmra.mxu0 %v525_v50  ;;  %v526_v53 = vld [vmem:[#allocation4] sm:$0xff] }
 0x14e   : > { %568 = vmatmul.f32.vlgmr.msra.gmra.mxu1 %v526_v53 }
 0x150   : > { %v479_v54 = vld.sshfl [vmem:[#allocation1] sm:$0xff pattern:$0x75316420]  ;;  %v480_v55 = vld.sshfl [vmem:[#allocation1 + $0x8] sm:$0xff pattern:$0x75316420] }
 0x151   : > { %v483_v56 = vmul.f32 %v479_v54, %v474_v51  ;;  %v484_v57 = vmul.f32 %v480_v55, %v475_v52 }
 0x153   : > { %v487_v58 = vrot.slane %v483_v56, 4  ;;  %v488_v59 = vrot.slane %v484_v57, 4 }
 0x155   : > { %491 = vst [vmem:[#allocation4 + $0x18] sm:$0xf0] %v487_v58 }
 0x156   : > { %492 = vst [vmem:[#allocation4 + $0x8] sm:$0xf0] %v488_v59 }
 0x15c   : > { %v527_v60 = vld [vmem:[#allocation4 + $0x18] sm:$0xff] }
 0x15d   : > { %548 = vmatmul.f32.vlgmr.msra.gmra.mxu2 %v527_v60  ;;  %v528_v35 = vld [vmem:[#allocation4 + $0x8] sm:$0xff] }
 0x15e   : > { %571 = vmatmul.f32.vlgmr.msra.gmra.mxu3 %v528_v35 }
 0x1ca   : > { %v546_v36 = vpop.f32.mrf.mxu0 }
 0x1cb   : > { %v569_v61 = vpop.f32.mrf.mxu1 }
 0x1cc   : > { %v570_v62 = vadd.f32 %v569_v61, %v546_v36 }
 0x1ce   : > { %576 = vst.msk [vmem:[%s973_s7] sm:$0xff] %vm575_vm12, %v570_v62 }
 0x1e0   : > { %v549_v63 = vpop.f32.mrf.mxu2 }
 0x1e1   : > { %v572_v0 = vpop.f32.mrf.mxu3 }
 0x1e2   : > { %v573_v1 = vadd.f32 %v572_v0, %v549_v63 }
 0x1e4   : > { %577 = vst.msk [vmem:[%s973_s7 + $0x8] sm:$0xff] %vm575_vm12, %v573_v1 }
 0x1e5 PF: > { %s22_s18 = sadd.s32 1, %s908_s18   ;;  %s1135_s16 = smov %s904_s17 }
 0x1e6   : > { %p19_p3 = scmp.ge.s32.totalorder %s22_s18, 8   ;;  %s1136_s17 = smov %s1138_s19 }
 0x1e8   :  { %21 = sbr.rel (!%p19_p3) target bundleno = 8 (0x8), region = 102 }
 0x1ed   :  { %605 = vsyncpa [#allocation8], 1 }
 0x1ee   :  { %607 = vsyncpa [#allocation8 + $0x1], 1 }

</bundles_post_ra>
